<compile_context>
chip_gen: v6e
topology: v6e:2x2x1
jax: 0.10.0
libtpu: 0.0.40
codegen_flags: <defaults>
</compile_context>

<pallas_src>
import functools

import numpy as np
import jax
import jax.numpy as jnp
from jax import lax
from jax.experimental import pallas as pl
from jax.experimental.pallas import tpu as pltpu

F32 = jnp.float32
BF16 = jnp.bfloat16

# ------------------------------------------------------------------ config ---
CAV_RANGE = [-8.0, -8.0, -3.0, 8.0, 8.0, 1.0]     # lidar_range
VOXEL_SIZE = [1.0, 1.0, 4.0]
GRID_H = int((CAV_RANGE[4] - CAV_RANGE[1]) / VOXEL_SIZE[1])   # 16
GRID_W = int((CAV_RANGE[3] - CAV_RANGE[0]) / VOXEL_SIZE[0])   # 16
D_BINS = 4
DDISCR = [2.0, 6.0, D_BINS]                       # camera depth discretization
XBOUND = [-8.0, 8.0, 1.0]
YBOUND = [-8.0, 8.0, 1.0]
ZBOUND = [-10.0, 10.0, 20.0]
C_VFE = 32          # pillar feature dim
C_CAM = 32          # camera BEV channels out of lift-splat
C_LIGHT = 64        # light backbone out channels
ANCHOR_NUM = 2
NUM_BINS = 2
HEAD_N = ANCHOR_NUM + 7 * ANCHOR_NUM + NUM_BINS * ANCHOR_NUM   # 20
HEAD_PAD = 128                                                  # lane-dense head width

_ARB = pltpu.CompilerParams(dimension_semantics=("arbitrary",))


def full_spec(shape):
    r = len(shape)
    return pl.BlockSpec(shape, lambda i, _r=r: (0,) * _r)

# ============================================================ Pallas kernels =

def _vfe_kernel(x_ref, w_ref, b_ref, o_ref, *, P, Npts):
    """Pillar VFE: (Npts*P,16)@(16,32)+b, ReLU, max over points -> (P,32).

    Point axis leads, so the max is an elementwise slab max (VPU only, no XLU)."""
    x = x_ref[...].astype(BF16)
    y = jnp.dot(x, w_ref[...], preferred_element_type=jnp.float32)
    y = jnp.maximum(y + b_ref[...], 0.0)
    o_ref[...] = jnp.max(y.reshape(Npts, P, y.shape[-1]), axis=0)


def run_vfe(x2d, w, b, P, Npts):
    Kp = x2d.shape[-1]
    Cf = w.shape[-1]
    return pl.pallas_call(
        functools.partial(_vfe_kernel, P=P, Npts=Npts),
        out_shape=jax.ShapeDtypeStruct((P, Cf), F32),
        grid=(1,),
        in_specs=[pl.BlockSpec((Npts * P, Kp), lambda i: (0, 0)),
                  pl.BlockSpec((Kp, Cf), lambda i: (0, 0)),
                  pl.BlockSpec((1, Cf), lambda i: (0, 0))],
        out_specs=pl.BlockSpec((P, Cf), lambda i: (0, 0)),
        compiler_params=_ARB,
    )(x2d, w, b)


def _conv3x3_s1_kernel(x_ref, w_ref, b_ref, o_ref, *, H, W, mask_box):
    """3x3 stride-1 conv + folded BN + ReLU (+rect mask) per agent.

    The 9 taps are concatenated along K -> a single big-K bf16 matmul."""
    Cin = x_ref.shape[-1]
    Cout = w_ref.shape[-1]
    x = x_ref[...].astype(BF16)                                      # (1, H+2, W+2, Cin)
    taps = [x[:, di:di + H, dj:dj + W, :].reshape(H * W, Cin)
            for di in range(3) for dj in range(3)]
    g = jnp.concatenate(taps, axis=-1)                               # (H*W, 9*Cin)
    acc = jnp.dot(g, w_ref[...], preferred_element_type=jnp.float32) + b_ref[...]
    acc = jnp.maximum(acc, 0.0).reshape(H, W, Cout)
    if mask_box is not None:                                         # camera FOV mask, in-kernel iota
        sH, eH, sW, eW = mask_box
        rows = lax.broadcasted_iota(jnp.int32, (H, W, Cout), 0)
        cols = lax.broadcasted_iota(jnp.int32, (H, W, Cout), 1)
        keep = (rows >= sH) & (rows < eH) & (cols >= sW) & (cols < eW)
        acc = jnp.where(keep, acc, 0.0)
    o_ref[...] = acc.reshape(1, H, W, Cout)


def conv3x3_s1(xpad, w_big, b, H, W, mask_box=None):
    B, Hp, Wp, Cin = xpad.shape
    Cout = w_big.shape[-1]
    return pl.pallas_call(
        functools.partial(_conv3x3_s1_kernel, H=H, W=W, mask_box=mask_box),
        out_shape=jax.ShapeDtypeStruct((B, H, W, Cout), F32),
        grid=(B,),
        in_specs=[pl.BlockSpec((1, Hp, Wp, Cin), lambda i: (i, 0, 0, 0)),
                  pl.BlockSpec((9 * Cin, Cout), lambda i: (0, 0)),
                  pl.BlockSpec((1, Cout), lambda i: (0, 0))],
        out_specs=pl.BlockSpec((1, H, W, Cout), lambda i: (i, 0, 0, 0)),
        compiler_params=pltpu.CompilerParams(dimension_semantics=("parallel",)),
    )(xpad, w_big, b)


def _cam_encode_kernel(xc_ref, wt_ref, bt_ref, wd_ref, bd_ref, e_ref, wc_ref, bc_ref, o_ref):
    """Camera trunk conv (im2col matmul) + depth softmax ⊗ context lift, D*C on lanes."""
    cols = xc_ref[...].astype(BF16)
    feat = jnp.dot(cols, wt_ref[...], preferred_element_type=jnp.float32)
    feat = jnp.maximum(feat + bt_ref[...], 0.0)                       # (Npix, 16)
    feat_bf = feat.astype(BF16)
    logits = jnp.dot(feat_bf, wd_ref[...], preferred_element_type=jnp.float32) + bd_ref[...]
    logits = logits - jnp.max(logits, axis=-1, keepdims=True)
    pexp = jnp.exp(logits)
    dep = pexp * pl.reciprocal(jnp.sum(pexp, axis=-1, keepdims=True), approx=True)  # (Npix, D)
    dep_exp = jnp.dot(dep.astype(BF16), e_ref[...], preferred_element_type=jnp.float32)
    ctx = jnp.dot(feat_bf, wc_ref[...], preferred_element_type=jnp.float32) + bc_ref[...]
    o_ref[...] = dep_exp * ctx                                        # (Npix, D*C)


def run_cam_encode(cols, p):
    Npix, Kp = cols.shape
    DC = D_BINS * C_CAM
    ins = [cols, p['cam_trunk_w'], p['cam_trunk_b'], p['cam_dep_w'], p['cam_dep_b'],
           p['cam_e'], p['cam_ctx_w'], p['cam_ctx_b']]
    return pl.pallas_call(
        _cam_encode_kernel,
        out_shape=jax.ShapeDtypeStruct((Npix, DC), F32),
        grid=(1,),
        in_specs=[full_spec(x.shape) for x in ins],
        out_specs=pl.BlockSpec((Npix, DC), lambda i: (0, 0)),
        compiler_params=_ARB,
    )(*ins)


def _mega_kernel(h_ref, wsg_ref, bsg_ref,
                 s1_ref, wfb1_ref, bfb1_ref,
                 s2_ref, wfb2_ref, bfb2_ref,
                 wde0_ref, bde0_ref,
                 wde1_ref, bde1_ref, ps1_ref,
                 wde2_ref, bde2_ref, ps2_ref,
                 ssh_ref, wsh_ref, bsh_ref,
                 whd_ref, bhd_ref,
                 single_ref, head_ref, *, n):
    """Single heads + fb1/fb2 + MaxFusion(3 scales) + deconvs + shrink + fused heads."""
    HW = GRID_H * GRID_W
    h4 = h_ref[...]                                                   # (n, 16, 16, 64) f32
    heter = h4.reshape(n * HW, C_LIGHT)
    heter_bf = heter.astype(BF16)

    # ---- before-fusion single heads (cls|reg|dir packed to 128 lanes)
    single_ref[...] = (jnp.dot(heter_bf, wsg_ref[...], preferred_element_type=jnp.float32)
                       + bsg_ref[...])

    # ---- 3x3 convs as gather matmuls (0/1 select matrices fold stride + zero padding)
    #      followed by ONE big-K matmul on the tap-concatenated input.
    def gathered_conv(x_bf, s_ref, w_ref, b_ref):
        taps = [jnp.dot(s_ref[t], x_bf, preferred_element_type=jnp.float32).astype(BF16)
                for t in range(9)]
        g = jnp.concatenate(taps, axis=-1)
        return jnp.dot(g, w_ref[...], preferred_element_type=jnp.float32) + b_ref[...]

    fb1 = jnp.maximum(gathered_conv(heter_bf, s1_ref, wfb1_ref, bfb1_ref), 0.0)   # (n*64, 128)
    fb2 = jnp.maximum(gathered_conv(fb1.astype(BF16), s2_ref, wfb2_ref, bfb2_ref), 0.0)  # (n*16, 256)

    # ---- MaxFusion over agents at every scale (pairwise transforms identity here)
    f0 = jnp.max(h4.reshape(n, HW, C_LIGHT), axis=0).astype(BF16)                 # (256, 64)
    f1 = jnp.max(fb1.reshape(n, HW // 4, 128), axis=0).astype(BF16)               # (64, 128)
    f2 = jnp.max(fb2.reshape(n, HW // 16, 256), axis=0).astype(BF16)              # (16, 256)

    # ---- decode_multiscale_feature: deconv matmuls + pixel-shuffle scatter matmuls
    u0 = jnp.maximum(jnp.dot(f0, wde0_ref[...], preferred_element_type=jnp.float32)
                     + bde0_ref[...], 0.0)                                        # (256, 64)
    de1 = jnp.maximum(jnp.dot(f1, wde1_ref[...], preferred_element_type=jnp.float32)
                      + bde1_ref[...], 0.0).astype(BF16)                          # (64, 256)
    u1 = jnp.zeros((HW, C_LIGHT), jnp.float32)
    for p_idx in range(4):
        u1 = u1 + jnp.dot(ps1_ref[p_idx], de1[:, p_idx * 64:(p_idx + 1) * 64],
                          preferred_element_type=jnp.float32)
    de2 = jnp.maximum(jnp.dot(f2, wde2_ref[...], preferred_element_type=jnp.float32)
                      + bde2_ref[...], 0.0).astype(BF16)                          # (16, 1024)
    u2 = jnp.zeros((HW, C_LIGHT), jnp.float32)
    for p_idx in range(16):
        u2 = u2 + jnp.dot(ps2_ref[p_idx], de2[:, p_idx * 64:(p_idx + 1) * 64],
                          preferred_element_type=jnp.float32)

    fused = jnp.concatenate([u0, u1, u2], axis=-1).astype(BF16)                   # (256, 192)

    # ---- shrink conv + fused heads (packed to 128 lanes), all still in VMEM
    shr = jnp.maximum(gathered_conv(fused, ssh_ref, wsh_ref, bsh_ref), 0.0)       # (256, 128)
    head_ref[...] = (jnp.dot(shr.astype(BF16), whd_ref[...],
                             preferred_element_type=jnp.float32) + bhd_ref[...])


def run_mega(heter, sel, p):
    n = heter.shape[0]
    HW = GRID_H * GRID_W
    ins = [heter,
           p['single_w'], p['single_b'],
           sel['s_fb1'], p['fb1_w'], p['fb1_b'],
           sel['s_fb2'], p['fb2_w'], p['fb2_b'],
           p['de0_w'], p['de0_b'],
           p['de1_w'], p['de1_b'], sel['ps1'],
           p['de2_w'], p['de2_b'], sel['ps2'],
           sel['s_sh'], p['shrink_w'], p['shrink_b'],
           p['head_w'], p['head_b']]
    return pl.pallas_call(
        functools.partial(_mega_kernel, n=n),
        out_shape=(jax.ShapeDtypeStruct((n * HW, HEAD_PAD), F32),
                   jax.ShapeDtypeStruct((HW, HEAD_PAD), F32)),
        grid=(1,),
        in_specs=[full_spec(x.shape) for x in ins],
        out_specs=(full_spec((n * HW, HEAD_PAD)), full_spec((HW, HEAD_PAD))),
        compiler_params=_ARB,
    )(*ins)

# ------------------------------------------- constant select / scatter mats --

def conv3x3_select_mats(B, H, W, stride):
    """0/1 gather matrices S[t] (B*Ho*Wo, B*H*W) for a 3x3 conv, pad=1, given stride."""
    Ho = (H - 1) // stride + 1
    Wo = (W - 1) // stride + 1
    s = np.zeros((9, Ho * Wo, H * W), np.float32)
    for di in range(3):
        for dj in range(3):
            t = di * 3 + dj
            for i in range(Ho):
                r = stride * i + di - 1
                if r < 0 or r >= H:
                    continue
                for j in range(Wo):
                    c = stride * j + dj - 1
                    if c < 0 or c >= W:
                        continue
                    s[t, i * Wo + j, r * W + c] = 1.0
    if B > 1:
        s = np.stack([np.kron(np.eye(B, dtype=np.float32), s[t]) for t in range(9)])
    return jnp.asarray(s, dtype=BF16)


def pixel_shuffle_mats(Hc, Wc, s):
    """0/1 scatter matrices P[p] (Hf*Wf, Hc*Wc) for ConvTranspose(k=s, stride=s) placement."""
    Hf, Wf = Hc * s, Wc * s
    P = np.zeros((s * s, Hf * Wf, Hc * Wc), np.float32)
    for rr in range(Hf):
        for cc in range(Wf):
            p = (rr % s) * s + (cc % s)
            P[p, rr * Wf + cc, (rr // s) * Wc + (cc // s)] = 1.0
    return jnp.asarray(P, dtype=BF16)


def build_selection_constants(n):
    return {
        's_fb1': conv3x3_select_mats(n, GRID_H, GRID_W, 2),
        's_fb2': conv3x3_select_mats(n, GRID_H // 2, GRID_W // 2, 2),
        's_sh': conv3x3_select_mats(1, GRID_H, GRID_W, 1),
        'ps1': pixel_shuffle_mats(GRID_H // 2, GRID_W // 2, 2),
        'ps2': pixel_shuffle_mats(GRID_H // 4, GRID_W // 4, 4),
    }

# ------------------------------------------------------------ wrapper glue ---

def camera_mask_box(H, W):
    rH = min(DDISCR[1] / CAV_RANGE[4], 1.0)
    rW = min(DDISCR[1] / CAV_RANGE[3], 1.0)
    sH = int(np.clip(int(H / 2 - H / 2 * rH), 0, H))
    eH = int(np.clip(int(H / 2 + H / 2 * rH), 0, H))
    sW = int(np.clip(int(W / 2 - W / 2 * rW), 0, W))
    eW = int(np.clip(int(W / 2 + W / 2 * rW), 0, W))
    return sH, eH, sW, eW


def create_frustum(imH, imW, fH, fW):
    ds = jnp.linspace(DDISCR[0], DDISCR[1], D_BINS)
    xs = jnp.linspace(0.0, imW - 1.0, fW)
    ys = jnp.linspace(0.0, imH - 1.0, fH)
    d_grid = jnp.broadcast_to(ds[:, None, None], (D_BINS, fH, fW))
    x_grid = jnp.broadcast_to(xs[None, None, :], (D_BINS, fH, fW))
    y_grid = jnp.broadcast_to(ys[None, :, None], (D_BINS, fH, fW))
    return jnp.stack([x_grid, y_grid, d_grid], axis=-1)          # (D,fH,fW,3)


def get_geometry(rots, trans, intrins, post_rots, post_trans, frustum):
    pts = frustum[None, None] - post_trans[:, :, None, None, None, :]
    pts = jnp.einsum('bnij,bndhwj->bndhwi', jnp.linalg.inv(post_rots), pts)
    pts = jnp.concatenate([pts[..., :2] * pts[..., 2:3], pts[..., 2:3]], axis=-1)
    combine = jnp.einsum('bnij,bnjk->bnik', rots, jnp.linalg.inv(intrins))
    pts = jnp.einsum('bnij,bndhwj->bndhwi', combine, pts)
    return pts + trans[:, :, None, None, None, :]                # (B,N,D,fH,fW,3)


def voxel_pooling(geom, feats):
    """Sum-splat camera frustum features into the BEV grid (JAX scatter glue)."""
    # TODO(synk): pillar/voxel scatter-splat has no clean Pallas equivalent; JAX segment_sum.
    B = geom.shape[0]
    C = feats.shape[-1]
    dx = jnp.array([XBOUND[2], YBOUND[2], ZBOUND[2]], F32)
    bx = jnp.array([XBOUND[0] + XBOUND[2] / 2.0,
                    YBOUND[0] + YBOUND[2] / 2.0,
                    ZBOUND[0] + ZBOUND[2] / 2.0], F32)
    nx0 = int((XBOUND[1] - XBOUND[0]) / XBOUND[2])
    nx1 = int((YBOUND[1] - YBOUND[0]) / YBOUND[2])
    nx2 = int((ZBOUND[1] - ZBOUND[0]) / ZBOUND[2])
    g = geom.reshape(B, -1, 3)
    f = feats.reshape(B, -1, C)
    idx = jnp.floor((g - (bx - dx / 2.0)) / dx).astype(jnp.int32)
    valid = ((idx[..., 0] >= 0) & (idx[..., 0] < nx0) &
             (idx[..., 1] >= 0) & (idx[..., 1] < nx1) &
             (idx[..., 2] >= 0) & (idx[..., 2] < nx2))
    nseg = nx1 * nx0
    flat = jnp.where(valid, idx[..., 1] * nx0 + idx[..., 0], nseg)   # row<-y, col<-x
    bevs = []
    for b in range(B):
        s = jax.ops.segment_sum(f[b], flat[b], num_segments=nseg + 1)
        bevs.append(s[:nseg].reshape(nx1, nx0, C))
    return jnp.stack(bevs, axis=0)                                   # (B,H,W,C)


def normalize_pairwise_tfm(pairwise_t_matrix, H, W, fake_voxel_size=1):
    t = pairwise_t_matrix[:, :, :, [0, 1], :][:, :, :, :, [0, 1, 3]]
    t = t.at[..., 0, 1].multiply(H / W)
    t = t.at[..., 1, 0].multiply(W / H)
    t = t.at[..., 0, 2].set(t[..., 0, 2] / (W * fake_voxel_size) * 2)
    t = t.at[..., 1, 2].set(t[..., 1, 2] / (H * fake_voxel_size) * 2)
    return t

# ------------------------------------------------------------ parameters -----

def conv3x3_bigk(w, scale):
    """(3,3,Cin,Cout) * BN-scale -> tap-major (9*Cin, Cout) bf16 weight."""
    w = w * scale[None, None, None, :]
    return w.reshape(9 * w.shape[2], w.shape[3]).astype(BF16)


def pack_heads(ws, bs, pad_to=HEAD_PAD):
    wcat = jnp.concatenate(ws, axis=1)
    bcat = jnp.concatenate(bs)
    Cin, N = wcat.shape
    wp = jnp.zeros((Cin, pad_to), F32).at[:, :N].set(wcat).astype(BF16)
    bp = jnp.zeros((1, pad_to), F32).at[:, :N].set(bcat)
    return wp, bp


def init_params(key):
    keys = iter(jax.random.split(key, 96))

    def w(shape):
        return 0.05 * jax.random.normal(next(keys), shape, dtype=F32)

    def bn(nch):
        return (1.0 + 0.02 * jax.random.normal(next(keys), (nch,), dtype=F32),
                0.02 * jax.random.normal(next(keys), (nch,), dtype=F32))

    def bias(nch):
        return 0.02 * jax.random.normal(next(keys), (nch,), dtype=F32)

    p = {}
    # TODO(synk): with real checkpoints the BN running mean/var must also be folded
    #             (w *= gamma/sqrt(var+eps), b = beta - gamma*mean/sqrt(var+eps)).

    # Pillar VFE: Linear(10->32)+BN+ReLU.  K padded 10->16, BN scale folded, bf16.
    w_vfe = w((10, C_VFE)); s_vfe, b_vfe = bn(C_VFE)
    p['vfe_w'] = jnp.zeros((16, C_VFE), F32).at[:10].set(w_vfe * s_vfe[None, :]).astype(BF16)
    p['vfe_b'] = b_vfe.reshape(1, C_VFE)

    # lidar light backbone layer-0: conv3x3 s1 (32->64) + BN + ReLU
    w_l0 = w((3, 3, C_VFE, C_LIGHT)); s_l0, b_l0 = bn(C_LIGHT)
    p['lidar_l0_w'] = conv3x3_bigk(w_l0, s_l0)
    p['lidar_l0_b'] = b_l0.reshape(1, C_LIGHT)

    # camera trunk: conv3x3 s2 (3->16) + BN + ReLU.  im2col K = 27 padded -> 32.
    w_ct = w((3, 3, 3, 16)); s_ct, b_ct = bn(16)
    wct = (w_ct * s_ct).reshape(27, 16)
    p['cam_trunk_w'] = jnp.zeros((32, 16), F32).at[:27].set(wct).astype(BF16)
    p['cam_trunk_b'] = b_ct.reshape(1, 16)

    # camera depth/context heads (1x1): depth softmax ⊗ context packed on 128 lanes.
    wd = w((16, D_BINS)); bd = bias(D_BINS)
    wc = w((16, C_CAM)); bc = bias(C_CAM)
    p['cam_dep_w'] = wd.astype(BF16)
    p['cam_dep_b'] = bd.reshape(1, D_BINS)
    p['cam_ctx_w'] = jnp.tile(wc, (1, D_BINS)).astype(BF16)          # (16, D*C)
    p['cam_ctx_b'] = jnp.tile(bc, D_BINS).reshape(1, D_BINS * C_CAM)
    p['cam_e'] = jnp.asarray(np.kron(np.eye(D_BINS, dtype=np.float32),
                                     np.ones((1, C_CAM), np.float32)), dtype=BF16)

    # camera light backbone layer-0: conv3x3 s1 (32->64) + BN + ReLU
    w_c0 = w((3, 3, C_CAM, C_LIGHT)); s_c0, b_c0 = bn(C_LIGHT)
    p['cam_l0_w'] = conv3x3_bigk(w_c0, s_c0)
    p['cam_l0_b'] = b_c0.reshape(1, C_LIGHT)

    # single heads (1x1 convs with bias), packed cls|reg|dir -> 128 lanes
    ws_c, bs_c = w((C_LIGHT, ANCHOR_NUM)), bias(ANCHOR_NUM)
    ws_r, bs_r = w((C_LIGHT, 7 * ANCHOR_NUM)), bias(7 * ANCHOR_NUM)
    ws_d, bs_d = w((C_LIGHT, NUM_BINS * ANCHOR_NUM)), bias(NUM_BINS * ANCHOR_NUM)
    p['single_w'], p['single_b'] = pack_heads([ws_c, ws_r, ws_d], [bs_c, bs_r, bs_d])

    # fusion backbone layers 1 / 2 (conv3x3 s2 + BN + ReLU), tap-major big-K form
    w_fb1 = w((3, 3, 64, 128)); s_fb1, b_fb1 = bn(128)
    p['fb1_w'] = conv3x3_bigk(w_fb1, s_fb1)
    p['fb1_b'] = b_fb1.reshape(1, 128)
    w_fb2 = w((3, 3, 128, 256)); s_fb2, b_fb2 = bn(256)
    p['fb2_w'] = conv3x3_bigk(w_fb2, s_fb2)
    p['fb2_b'] = b_fb2.reshape(1, 256)

    # deblocks (ConvTranspose2d kernel=stride=s + BN + ReLU), matmul + scatter form.
    # TODO(synk): real PyTorch ConvTranspose2d weights are (Cin, Cout, kH, kW); permute to
    #             the (Cin, kH, kW, Cout)-flattened layout assumed here before loading.
    w_de0 = w((64, 64)); s_de0, b_de0 = bn(64)
    p['de0_w'] = (w_de0 * s_de0[None, :]).astype(BF16)
    p['de0_b'] = b_de0.reshape(1, 64)
    w_de1 = w((128, 2, 2, 64)).reshape(128, 256); s_de1, b_de1 = bn(64)
    p['de1_w'] = (w_de1 * jnp.tile(s_de1, 4)[None, :]).astype(BF16)
    p['de1_b'] = jnp.tile(b_de1, 4).reshape(1, 256)
    w_de2 = w((256, 4, 4, 64)).reshape(256, 1024); s_de2, b_de2 = bn(64)
    p['de2_w'] = (w_de2 * jnp.tile(s_de2, 16)[None, :]).astype(BF16)
    p['de2_b'] = jnp.tile(b_de2, 16).reshape(1, 1024)

    # shrink header: conv3x3 s1 (192->128) + BN + ReLU
    w_sh = w((3, 3, 192, 128)); s_sh, b_sh = bn(128)
    p['shrink_w'] = conv3x3_bigk(w_sh, s_sh)
    p['shrink_b'] = b_sh.reshape(1, 128)

    # fused heads, packed cls|reg|dir -> 128 lanes
    wf_c, bf_c = w((128, ANCHOR_NUM)), bias(ANCHOR_NUM)
    wf_r, bf_r = w((128, 7 * ANCHOR_NUM)), bias(7 * ANCHOR_NUM)
    wf_d, bf_d = w((128, NUM_BINS * ANCHOR_NUM)), bias(NUM_BINS * ANCHOR_NUM)
    p['head_w'], p['head_b'] = pack_heads([wf_c, wf_r, wf_d], [bf_c, bf_r, bf_d])
    return p

# --------------------------------------------------------------- forward -----

def forward(params, data):
    out = {}
    lidar_ind = data['lidar_agent_record']     # static python list of 0/1
    record_len = data['record_len']            # static python list
    n_agents = int(sum(record_len))
    skip_lidar = (sum(lidar_ind) == 0)
    skip_camera = (sum(lidar_ind) == n_agents)

    # ---------------- LiDAR encode: PillarVFE + scatter + light backbone -----
    lidar_feat = None
    if not skip_lidar:
        vf = data['voxel_features']            # (P, Npts, 10)
        vc = data['voxel_coords']              # (P, 4) int [batch, z, y, x]
        vn = data['voxel_num_points']          # (P,)
        P, Npts, Cpt = vf.shape
        vf16 = jnp.pad(vf, ((0, 0), (0, 0), (0, 16 - Cpt)))
        # Invalid points are zeroed on the INPUT only (exactly as PillarVFE in the
        # PyTorch reference); the post-activation max then matches the reference.
        pt_mask = (jnp.arange(Npts)[None, :] < vn[:, None]).astype(F32)
        x2d = (vf16 * pt_mask[..., None]).transpose(1, 0, 2).reshape(Npts * P, 16)
        pillar_feat = run_vfe(x2d, params['vfe_w'], params['vfe_b'], P, Npts)   # (P,32)

        n_lidar = int(sum(lidar_ind))
        # TODO(synk): PointPillarScatter uses a JAX scatter (no clean Pallas equivalent).
        flat = vc[:, 0] * (GRID_H * GRID_W) + vc[:, 2] * GRID_W + vc[:, 3]
        canvas = jnp.zeros((n_lidar * GRID_H * GRID_W, C_VFE), F32).at[flat].set(pillar_feat)
        spatial = canvas.reshape(n_lidar, GRID_H, GRID_W, C_VFE)
        spatial_pad = jnp.pad(spatial, ((0, 0), (1, 1), (1, 1), (0, 0)))
        lidar_feat = conv3x3_s1(spatial_pad, params['lidar_l0_w'], params['lidar_l0_b'],
                                GRID_H, GRID_W)
        # TODO(synk): AlignNet (lidar_aligner) treated as identity (args=None path).

    # ---------------- Camera encode: simplified LiftSplatShoot ---------------
    cam_feat = None
    if not skip_camera:
        imgs = data['imgs']                    # (Bc, Ncam, 3, imH, imW) NCHW
        rots, trans = data['rots'], data['trans']
        intrins = data['intrins']
        post_rots, post_trans = data['post_rots'], data['post_trans']
        Bc, Ncam, _, imH, imW = imgs.shape
        x = imgs.reshape(Bc * Ncam, 3, imH, imW).transpose(0, 2, 3, 1)   # -> NHWC
        # TODO(synk): EfficientNet trunk of CamEncode reduced to one conv block.
        fH = (imH + 2 - 3) // 2 + 1
        fW = (imW + 2 - 3) // 2 + 1
        xp = jnp.pad(x, ((0, 0), (1, 1), (1, 1), (0, 0)))
        cols = jnp.concatenate([xp[:, di:di + 2 * fH:2, dj:dj + 2 * fW:2, :]
                                for di in range(3) for dj in range(3)], axis=-1)
        cols = jnp.pad(cols, ((0, 0), (0, 0), (0, 0), (0, 32 - 27)))
        cols = cols.reshape(Bc * Ncam * fH * fW, 32)

        lifted = run_cam_encode(cols, params)                        # (Npix, D*C) lane-dense
        vol = lifted.reshape(Bc, Ncam, fH, fW, D_BINS, C_CAM).transpose(0, 1, 4, 2, 3, 5)
        frustum = create_frustum(imH, imW, fH, fW)
        geom = get_geometry(rots, trans, intrins, post_rots, post_trans, frustum)
        cam_bev = voxel_pooling(geom, vol)                           # (Bc,16,16,C_CAM)

        H, W = cam_bev.shape[1:3]
        cam_bev_pad = jnp.pad(cam_bev, ((0, 0), (1, 1), (1, 1), (0, 0)))
        cam_feat = conv3x3_s1(cam_bev_pad, params['cam_l0_w'], params['cam_l0_b'],
                              H, W, mask_box=camera_mask_box(H, W))  # FOV mask fused in-kernel
        # TODO(synk): DeformAlignNet (camera_aligner) treated as identity.

    t_matrix = normalize_pairwise_tfm(data['pairwise_t_matrix'],
                                      CAV_RANGE[4] - CAV_RANGE[1],
                                      CAV_RANGE[3] - CAV_RANGE[0], 1)
    del t_matrix  # identity transforms in this example; warp_affine omitted (TODO(synk))

    # ---------------- Heterogeneous agent selection ---------------------------
    if skip_camera:
        heter = lidar_feat
    elif skip_lidar:
        heter = cam_feat
    else:
        feats, li, ci = [], 0, 0
        for i in range(n_agents):
            if lidar_ind[i]:
                feats.append(lidar_feat[li]); li += 1
            else:
                feats.append(cam_feat[ci]); ci += 1
        heter = jnp.stack(feats, axis=0)                  # (n_agents,16,16,64)

    n = heter.shape[0]

    # ------- Single heads + fusion backbone + MaxFusion + decode + shrink + heads
    #         (ONE fused pallas_call; fb1/fb2/deconv outputs never leave VMEM) --------
    sel = build_selection_constants(n)
    single, heads = run_mega(heter, sel, params)

    sing = single[:, :HEAD_N].reshape(n, GRID_H, GRID_W, HEAD_N)
    out['cls_preds_single'] = sing[..., 0:ANCHOR_NUM]
    out['reg_preds_single'] = sing[..., ANCHOR_NUM:ANCHOR_NUM + 7 * ANCHOR_NUM]
    out['dir_preds_single'] = sing[..., ANCHOR_NUM + 7 * ANCHOR_NUM:HEAD_N]
    # TODO(synk): FpvrcnnPostprocessor stage-1 box decode + PoiExtractor (NMS / ROI
    #             gather) have no clean Pallas equivalent; features pass through.

    hd = heads[:, :HEAD_N].reshape(1, GRID_H, GRID_W, HEAD_N)
    out['cls_preds'] = hd[..., 0:ANCHOR_NUM]
    out['reg_preds'] = hd[..., ANCHOR_NUM:ANCHOR_NUM + 7 * ANCHOR_NUM]
    out['dir_preds'] = hd[..., ANCHOR_NUM + 7 * ANCHOR_NUM:HEAD_N]
    return out

# ------------------------------------------------------------------- main ----

if __name__ == "__main__":
    key = jax.random.PRNGKey(0)
    kd = jax.random.split(key, 10)

    P, Npts, Cpt = 48, 8, 10
    voxel_features = 0.5 * jax.random.normal(kd[0], (P, Npts, Cpt), dtype=F32)
    ys = jax.random.randint(kd[1], (P,), 0, GRID_H).astype(jnp.int32)
    xs = jax.random.randint(kd[2], (P,), 0, GRID_W).astype(jnp.int32)
    voxel_coords = jnp.stack([jnp.zeros((P,), jnp.int32), jnp.zeros((P,), jnp.int32), ys, xs], axis=1)
    voxel_num_points = jax.random.randint(kd[3], (P,), 1, Npts + 1)

    imgs = jax.random.normal(kd[4], (1, 1, 3, 8, 16), dtype=F32)          # NCHW per camera
    rots = jnp.broadcast_to(jnp.eye(3, dtype=F32), (1, 1, 3, 3))
    trans = jnp.zeros((1, 1, 3), F32)
    intrins = jnp.broadcast_to(jnp.array([[8., 0., 8.], [0., 8., 4.], [0., 0., 1.]], F32), (1, 1, 3, 3))
    post_rots = jnp.broadcast_to(jnp.eye(3, dtype=F32), (1, 1, 3, 3))
    post_trans = jnp.zeros((1, 1, 3), F32)

    pairwise_t_matrix = jnp.broadcast_to(jnp.eye(4, dtype=F32), (1, 2, 2, 4, 4))

    data = dict(voxel_features=voxel_features,
                voxel_coords=voxel_coords,
                voxel_num_points=voxel_num_points,
                imgs=imgs, rots=rots, trans=trans, intrins=intrins,
                post_rots=post_rots, post_trans=post_trans,
                pairwise_t_matrix=pairwise_t_matrix,
                record_len=[2],                 # one batch group with 2 agents
                lidar_agent_record=[1, 0])      # agent0 = lidar, agent1 = camera

    params = init_params(jax.random.PRNGKey(42))
    out = forward(params, data)
    out = jax.block_until_ready(out)

    assert out['cls_preds_single'].shape == (2, 16, 16, ANCHOR_NUM)
    assert out['reg_preds_single'].shape == (2, 16, 16, 7 * ANCHOR_NUM)
    assert out['dir_preds_single'].shape == (2, 16, 16, NUM_BINS * ANCHOR_NUM)
    assert out['cls_preds'].shape == (1, 16, 16, ANCHOR_NUM)
    assert out['reg_preds'].shape == (1, 16, 16, 7 * ANCHOR_NUM)
    assert out['dir_preds'].shape == (1, 16, 16, NUM_BINS * ANCHOR_NUM)
    print("KERNEL_OK")
</pallas_src>

<mosaic_0001>
module attributes {stable_mosaic.version = 11 : i64} {
  func.func @_vfe_kernel(%arg0: i32, %arg1: memref<384x16xf32, #tpu.memory_space<vmem>>, %arg2: memref<16x32xbf16, #tpu.memory_space<vmem>>, %arg3: memref<1x32xf32, #tpu.memory_space<vmem>>, %arg4: memref<48x32xf32, #tpu.memory_space<vmem>>) attributes {dimension_semantics = [#tpu.dimension_semantics<arbitrary>], iteration_bounds = array<i64: 1>, scalar_prefetch = 0 : i64, scratch_operands = 0 : i64, tpu.core_type = #tpu.core_type<tc>, window_params = [{pipeline_mode = #tpu.pipeline_mode<synchronous>, transform_indices = @transform_0, window_bounds = array<i64: 384, 16>}, {pipeline_mode = #tpu.pipeline_mode<synchronous>, transform_indices = @transform_1, window_bounds = array<i64: 16, 32>}, {pipeline_mode = #tpu.pipeline_mode<synchronous>, transform_indices = @transform_2, window_bounds = array<i64: 1, 32>}, {pipeline_mode = #tpu.pipeline_mode<synchronous>, transform_indices = @transform_3, window_bounds = array<i64: 48, 32>}]} {
    %c0 = arith.constant 0 : index
    %c0_0 = arith.constant 0 : index
    %0 = vector.load %arg1[%c0, %c0_0] : memref<384x16xf32, #tpu.memory_space<vmem>>, vector<384x16xf32>
    %1 = arith.truncf %0 : vector<384x16xf32> to vector<384x16xbf16>
    %c0_1 = arith.constant 0 : index
    %c0_2 = arith.constant 0 : index
    %2 = vector.load %arg2[%c0_1, %c0_2] : memref<16x32xbf16, #tpu.memory_space<vmem>>, vector<16x32xbf16>
    %cst = arith.constant dense<0.000000e+00> : vector<384x32xf32>
    %3 = tpu.matmul %1, %2, %cst {dimension_numbers = #tpu.dot_dimension_numbers<[1], [0], [0], [1], [0, 0, 1, 1], [], []>} : vector<384x16xbf16>, vector<16x32xbf16>, vector<384x32xf32> -> vector<384x32xf32>
    %c0_3 = arith.constant 0 : index
    %c0_4 = arith.constant 0 : index
    %4 = vector.load %arg3[%c0_3, %c0_4] : memref<1x32xf32, #tpu.memory_space<vmem>>, vector<1x32xf32>
    %5 = vector.broadcast %4 : vector<1x32xf32> to vector<384x32xf32>
    %6 = arith.addf %3, %5 : vector<384x32xf32>
    %cst_5 = arith.constant 0.000000e+00 : f32
    %7 = vector.broadcast %cst_5 : f32 to vector<384x32xf32>
    %8 = arith.maximumf %6, %7 : vector<384x32xf32>
    %9 = vector.shape_cast %8 : vector<384x32xf32> to vector<8x48x32xf32>
    %cst_6 = arith.constant dense<0xFF800000> : vector<48x32xf32>
    %10 = vector.multi_reduction <maximumf>, %9, %cst_6 [0] : vector<8x48x32xf32> to vector<48x32xf32>
    %c0_7 = arith.constant 0 : index
    %c0_8 = arith.constant 0 : index
    %11 = vector.load %arg4[%c0_7, %c0_8] : memref<48x32xf32, #tpu.memory_space<vmem>>, vector<48x32xf32>
    tpu.vector_store %arg4[%c0_7, %c0_8], %10 {strides = array<i32>} : memref<48x32xf32, #tpu.memory_space<vmem>>, vector<48x32xf32>,
    return
  }
  func.func @transform_0(%arg0: i32) -> (i32, i32) {
    %c0_i32 = arith.constant 0 : i32
    %c0_i32_0 = arith.constant 0 : i32
    %c0_i32_1 = arith.constant 0 : i32
    return %c0_i32, %c0_i32_0 : i32, i32
  }
  func.func @transform_1(%arg0: i32) -> (i32, i32) {
    %c0_i32 = arith.constant 0 : i32
    %c0_i32_0 = arith.constant 0 : i32
    %c0_i32_1 = arith.constant 0 : i32
    return %c0_i32, %c0_i32_0 : i32, i32
  }
  func.func @transform_2(%arg0: i32) -> (i32, i32) {
    %c0_i32 = arith.constant 0 : i32
    %c0_i32_0 = arith.constant 0 : i32
    %c0_i32_1 = arith.constant 0 : i32
    return %c0_i32, %c0_i32_0 : i32, i32
  }
  func.func @transform_3(%arg0: i32) -> (i32, i32) {
    %c0_i32 = arith.constant 0 : i32
    %c0_i32_0 = arith.constant 0 : i32
    %c0_i32_1 = arith.constant 0 : i32
    return %c0_i32, %c0_i32_0 : i32, i32
  }
}

</mosaic_0001>

<bundles_post_ra>
// kernel: tpu_custom_call.1
= control target key start
LH: loop header
LB: loop body
LE: loop exit
PB: predicated region body
PF: predicated region fallthrough
CT: control target
= control target key end

     0   :  { %vm102_vm0 = vcmask 130048   ;;  %vm448_vm1 = vcmask 261120   ;;  %s1062_s1 = inlined_call_operand.vmem [shape: bf16[16,32], index: 1, kind: input, shape index: {}]   ;;  %s1063_s0 = inlined_call_operand.vmem [shape: f32[384,16], index: 0, kind: input, shape index: {}]   ;;  %s1064_s2 = inlined_call_operand.vmem [shape: f32[1,32], index: 2, kind: input, shape index: {}]   ;;  %s1065_s3 = inlined_call_operand.vmem [shape: f32[48,32], index: 3, kind: output, shape index: {}]  }
   0x1   :  { %v652_v0 = vld [vmem:[%s1062_s1] sm:$0xff]   ;;  %v16_v2 = vld [vmem:[%s1063_s0 + $0x8] sm:$0xff]  ;;  %v17_v3 = vld [vmem:[%s1063_s0 + $0x10] sm:$0xff] }
   0x2   :  { %v15_v1 = vld [vmem:[%s1063_s0] sm:$0xff]  ;;  %600 = vmatprep.subr.bf16.mxu0 %v652_v0  ;;  %650 = vmatprep.subr.bf16.mxu1 %v652_v0  ;;  %v18_v5 = vld [vmem:[%s1063_s0 + $0x18] sm:$0xff]  ;;  %v40_v7 = vld [vmem:[%s1063_s0 + $0xc8] sm:$0xff] }
   0x3   :  { %v63_v4 = vpack.c.bf16 %v16_v2, %v15_v1  ;;  %v39_v6 = vld [vmem:[%s1063_s0 + $0xc0] sm:$0xff]  ;;  %601 = vmatpush3.bf16.msra.mxu0 %v652_v0  ;;  %651 = vmatpush3.bf16.msra.mxu1 %v652_v0  ;;  %v64_v8 = vpack.c.bf16 %v18_v5, %v17_v3  ;;  %v41_v10 = vld [vmem:[%s1063_s0 + $0xd0] sm:$0xff]  ;;  %v42_v11 = vld [vmem:[%s1063_s0 + $0xd8] sm:$0xff] }
   0x4   :  { %v75_v9 = vpack.c.bf16 %v40_v7, %v39_v6  ;;  %v19_v12 = vld [vmem:[%s1063_s0 + $0x20] sm:$0xff]  ;;  %v76_v13 = vpack.c.bf16 %v42_v11, %v41_v10  ;;  %v20_v14 = vld [vmem:[%s1063_s0 + $0x28] sm:$0xff]  ;;  %v21_v18 = vld [vmem:[%s1063_s0 + $0x30] sm:$0xff] }
   0x5   :  { %602 = vmatprep.mubr.msk.bf16.mxu0 %vm102_vm0, %v63_v4  ;;  %v65_v15 = vpack.c.bf16 %v20_v14, %v19_v12  ;;  %v43_v16 = vld [vmem:[%s1063_s0 + $0xe0] sm:$0xff]  ;;  %v44_v17 = vld [vmem:[%s1063_s0 + $0xe8] sm:$0xff]  ;;  %v22_v19 = vld [vmem:[%s1063_s0 + $0x38] sm:$0xff] }
   0x6   :  { %626 = vmatprep.mubr.msk.bf16.mxu1 %vm102_vm0, %v75_v9  ;;  %603 = vmatmul.mubr.msk.bf16.vlgmr.msra.gmra.mxu0 %vm102_vm0, %v64_v8  ;;  %v77_v20 = vpack.c.bf16 %v44_v17, %v43_v16  ;;  %v45_v21 = vld [vmem:[%s1063_s0 + $0xf0] sm:$0xff]  ;;  %v46_v22 = vld [vmem:[%s1063_s0 + $0xf8] sm:$0xff]  ;;  %v23_v23 = vld [vmem:[%s1063_s0 + $0x40] sm:$0xff]  ;;  %v66_v27 = vpack.c.bf16 %v22_v19, %v21_v18 }
   0x7   :  { %627 = vmatmul.mubr.msk.bf16.vlgmr.msra.gmra.mxu1 %vm102_vm0, %v76_v13  ;;  %606 = vmatprep.mubr.msk.bf16.mxu0 %vm102_vm0, %v65_v15  ;;  %v24_v24 = vld [vmem:[%s1063_s0 + $0x48] sm:$0xff]  ;;  %v47_v25 = vld [vmem:[%s1063_s0 + $0x100] sm:$0xff]  ;;  %v78_v28 = vpack.c.bf16 %v46_v22, %v45_v21  ;;  %v25_v31 = vld [vmem:[%s1063_s0 + $0x50] sm:$0xff] }
   0x8   :  { %630 = vmatprep.mubr.msk.bf16.mxu1 %vm102_vm0, %v77_v20  ;;  %v48_v26 = vld [vmem:[%s1063_s0 + $0x108] sm:$0xff]  ;;  %v67_v29 = vpack.c.bf16 %v24_v24, %v23_v23  ;;  %v26_v32 = vld [vmem:[%s1063_s0 + $0x58] sm:$0xff]  ;;  %v49_v33 = vld [vmem:[%s1063_s0 + $0x110] sm:$0xff] }
   0x9   :  { %v79_v30 = vpack.c.bf16 %v48_v26, %v47_v25  ;;  %v50_v34 = vld [vmem:[%s1063_s0 + $0x118] sm:$0xff]  ;;  %v27_v35 = vld [vmem:[%s1063_s0 + $0x60] sm:$0xff]  ;;  %v28_v36 = vld [vmem:[%s1063_s0 + $0x68] sm:$0xff]  ;;  %v68_v39 = vpack.c.bf16 %v26_v32, %v25_v31 }
   0xa   :  { %v51_v37 = vld [vmem:[%s1063_s0 + $0x120] sm:$0xff]  ;;  %v52_v38 = vld [vmem:[%s1063_s0 + $0x128] sm:$0xff]  ;;  %v80_v40 = vpack.c.bf16 %v50_v34, %v49_v33  ;;  %v69_v41 = vpack.c.bf16 %v28_v36, %v27_v35  ;;  %v29_v43 = vld [vmem:[%s1063_s0 + $0x70] sm:$0xff] }
   0xb   :  { %v81_v42 = vpack.c.bf16 %v52_v38, %v51_v37  ;;  %v30_v44 = vld [vmem:[%s1063_s0 + $0x78] sm:$0xff]  ;;  %v53_v45 = vld [vmem:[%s1063_s0 + $0x130] sm:$0xff]  ;;  %v31_v47 = vld [vmem:[%s1063_s0 + $0x80] sm:$0xff] }
   0xc   :  { %v54_v46 = vld [vmem:[%s1063_s0 + $0x138] sm:$0xff]  ;;  %v32_v48 = vld [vmem:[%s1063_s0 + $0x88] sm:$0xff]  ;;  %v55_v49 = vld [vmem:[%s1063_s0 + $0x140] sm:$0xff]  ;;  %v70_v51 = vpack.c.bf16 %v30_v44, %v29_v43 }
   0xd   :  { %v56_v50 = vld [vmem:[%s1063_s0 + $0x148] sm:$0xff]  ;;  %v82_v52 = vpack.c.bf16 %v54_v46, %v53_v45  ;;  %v71_v53 = vpack.c.bf16 %v32_v48, %v31_v47  ;;  %v33_v55 = vld [vmem:[%s1063_s0 + $0x90] sm:$0xff]  ;;  %v34_v56 = vld [vmem:[%s1063_s0 + $0x98] sm:$0xff] }
   0xe   :  { %607 = vmatmul.mubr.msk.bf16.gmra.mxu0 %vm102_vm0, %v66_v27  ;;  %v83_v54 = vpack.c.bf16 %v56_v50, %v55_v49  ;;  %v57_v57 = vld [vmem:[%s1063_s0 + $0x150] sm:$0xff]  ;;  %v58_v58 = vld [vmem:[%s1063_s0 + $0x158] sm:$0xff]  ;;  %v35_v59 = vld [vmem:[%s1063_s0 + $0xa0] sm:$0xff]  ;;  %v72_v63 = vpack.c.bf16 %v34_v56, %v33_v55 }
   0xf   :  { %631 = vmatmul.mubr.msk.bf16.gmra.mxu1 %vm102_vm0, %v78_v28  ;;  %610 = vmatprep.mubr.msk.bf16.mxu0 %vm102_vm0, %v67_v29  ;;  %v36_v60 = vld [vmem:[%s1063_s0 + $0xa8] sm:$0xff]  ;;  %v59_v61 = vld [vmem:[%s1063_s0 + $0x160] sm:$0xff]  ;;  %v84_v0 = vpack.c.bf16 %v58_v58, %v57_v57  ;;  %v37_v3 = vld [vmem:[%s1063_s0 + $0xb0] sm:$0xff] }
  0x10   :  { %634 = vmatprep.mubr.msk.bf16.mxu1 %vm102_vm0, %v79_v30  ;;  %v60_v62 = vld [vmem:[%s1063_s0 + $0x168] sm:$0xff]  ;;  %v73_v1 = vpack.c.bf16 %v36_v60, %v35_v59  ;;  %v38_v4 = vld [vmem:[%s1063_s0 + $0xb8] sm:$0xff]  ;;  %v61_v5 = vld [vmem:[%s1063_s0 + $0x170] sm:$0xff] }
  0x11   :  { %v85_v2 = vpack.c.bf16 %v60_v62, %v59_v61  ;;  %v62_v6 = vld [vmem:[%s1063_s0 + $0x178] sm:$0xff]  ;;  %v74_v7 = vpack.c.bf16 %v38_v4, %v37_v3  ;;  %v847_v15 = vld [vmem:[%s1064_s2] ss:$0 sm:$0xff] }
  0x12   :  { %v86_v8 = vpack.c.bf16 %v62_v6, %v61_v5 }
  0x16   :  { %611 = vmatmul.mubr.msk.bf16.gmra.mxu0 %vm102_vm0, %v68_v39 }
  0x17   :  { %635 = vmatmul.mubr.msk.bf16.gmra.mxu1 %vm102_vm0, %v80_v40  ;;  %614 = vmatprep.mubr.msk.bf16.mxu0 %vm102_vm0, %v69_v41 }
  0x18   :  { %638 = vmatprep.mubr.msk.bf16.mxu1 %vm102_vm0, %v81_v42 }
  0x1e   :  { %615 = vmatmul.mubr.msk.bf16.gmra.mxu0 %vm102_vm0, %v70_v51 }
  0x1f   :  { %639 = vmatmul.mubr.msk.bf16.gmra.mxu1 %vm102_vm0, %v82_v52  ;;  %618 = vmatprep.mubr.msk.bf16.mxu0 %vm102_vm0, %v71_v53 }
  0x20   :  { %642 = vmatprep.mubr.msk.bf16.mxu1 %vm102_vm0, %v83_v54 }
  0x26   :  { %619 = vmatmul.mubr.msk.bf16.gmra.mxu0 %vm102_vm0, %v72_v63 }
  0x27   :  { %643 = vmatmul.mubr.msk.bf16.gmra.mxu1 %vm102_vm0, %v84_v0  ;;  %622 = vmatprep.mubr.msk.bf16.mxu0 %vm102_vm0, %v73_v1 }
  0x28   :  { %646 = vmatprep.mubr.msk.bf16.mxu1 %vm102_vm0, %v85_v2 }
  0x2e   :  { %623 = vmatmul.mubr.msk.bf16.gmra.mxu0 %vm102_vm0, %v74_v7 }
  0x2f   :  { %647 = vmatmul.mubr.msk.bf16.gmra.mxu1 %vm102_vm0, %v86_v8 }
  0xc6   :  { %v604_v9 = vpop.f32.mrf.mxu0 }
  0xc7   :  { %v628_v10 = vpop.f32.mrf.mxu1  ;;  %v218_v18 = vadd.f32 %v604_v9, %v847_v15 }
  0xc8   :  { %v209_v11 = vpop.f32.mrf.mxu0  ;;  %v314_v19 = vadd.f32 %v628_v10, %v847_v15 }
  0xc9   :  { %v305_v12 = vpop.f32.mrf.mxu1  ;;  %v210_v22 = vadd.f32 %v847_v15, %v209_v11  ;;  %v402_v28 = vmax.f32 %v218_v18, 0.0 }
  0xca   :  { %v605_v13 = vpop.f32.mrf.mxu0  ;;  %v306_v24 = vadd.f32 %v847_v15, %v305_v12  ;;  %v426_v29 = vmax.f32 %v314_v19, 0.0 }
  0xcb   :  { %v629_v14 = vpop.f32.mrf.mxu1  ;;  %v221_v23 = vadd.f32 %v605_v13, %v847_v15  ;;  %v400_v33 = vmax.f32 %v210_v22, 0.0  ;;  %v861_v43 = vsel %vm448_vm1, %v402_v28, -inf }
  0xcc   :  { %v212_v16 = vpop.f32.mrf.mxu0  ;;  %v317_v27 = vadd.f32 %v629_v14, %v847_v15  ;;  %v424_v36 = vmax.f32 %v306_v24, 0.0  ;;  %v864_v44 = vsel %vm448_vm1, %v426_v29, -inf }
  0xcd   :  { %v308_v17 = vpop.f32.mrf.mxu1  ;;  %v213_v34 = vadd.f32 %v847_v15, %v212_v16  ;;  %v403_v35 = vmax.f32 %v221_v23, 0.0  ;;  %v868_v49 = vsel %vm448_vm1, %v400_v33, -inf }
  0xce   :  { %v608_v20 = vpop.f32.mrf.mxu0  ;;  %v309_v37 = vadd.f32 %v847_v15, %v308_v17  ;;  %v427_v40 = vmax.f32 %v317_v27, 0.0  ;;  %v876_v54 = vsel %vm448_vm1, %v424_v36, -inf }
  0xcf   :  { %v632_v21 = vpop.f32.mrf.mxu1  ;;  %v234_v30 = vadd.f32 %v608_v20, %v847_v15  ;;  %v401_v50 = vmax.f32 %v213_v34, 0.0  ;;  %v873_v53 = vsel %vm448_vm1, %v403_v35, -inf }
  0xd0   :  { %v225_v25 = vpop.f32.mrf.mxu0  ;;  %v330_v41 = vadd.f32 %v632_v21, %v847_v15  ;;  %v425_v55 = vmax.f32 %v309_v37, 0.0  ;;  %v880_v59 = vsel %vm448_vm1, %v427_v40, -inf }
  0xd1   :  { %v321_v26 = vpop.f32.mrf.mxu1  ;;  %v406_v45 = vmax.f32 %v234_v30, 0.0  ;;  %v226_v46 = vadd.f32 %v847_v15, %v225_v25  ;;  %v889_v5 = vsel %vm448_vm1, %v401_v50, -inf }
  0xd2   :  { %v609_v31 = vpop.f32.mrf.mxu0  ;;  %v322_v51 = vadd.f32 %v847_v15, %v321_v26  ;;  %v430_v60 = vmax.f32 %v330_v41, 0.0  ;;  %v893_v9 = vsel %vm448_vm1, %v425_v55, -inf }
  0xd3   :  { %v633_v32 = vpop.f32.mrf.mxu1  ;;  %v237_v42 = vadd.f32 %v609_v31, %v847_v15  ;;  %v884_v63 = vsel %vm448_vm1, %v406_v45, -inf  ;;  %v404_v0 = vmax.f32 %v226_v46, 0.0 }
  0xd4   :  { %v228_v38 = vpop.f32.mrf.mxu0  ;;  %v333_v56 = vadd.f32 %v633_v32, %v847_v15  ;;  %v428_v6 = vmax.f32 %v322_v51, 0.0  ;;  %v451_v16 = vmax.f32 %v868_v49, %v884_v63  ;;  %v907_v21 = vsel %vm448_vm1, %v430_v60, -inf }
  0xd5   :  { %v324_v39 = vpop.f32.mrf.mxu1  ;;  %v407_v61 = vmax.f32 %v237_v42, 0.0  ;;  %v229_v62 = vadd.f32 %v847_v15, %v228_v38  ;;  %v904_v20 = vsel %vm448_vm1, %v404_v0, -inf }
  0xd6   :  { %v612_v47 = vpop.f32.mrf.mxu0  ;;  %v325_v1 = vadd.f32 %v847_v15, %v324_v39  ;;  %v431_v10 = vmax.f32 %v333_v56, 0.0  ;;  %v910_v26 = vsel %vm448_vm1, %v428_v6, -inf }
  0xd7   :  { %v636_v48 = vpop.f32.mrf.mxu1  ;;  %v250_v52 = vadd.f32 %v612_v47, %v847_v15  ;;  %v900_v17 = vsel %vm448_vm1, %v407_v61, -inf  ;;  %v405_v18 = vmax.f32 %v229_v62, 0.0 }
  0xd8   :  { %v241_v57 = vpop.f32.mrf.mxu0  ;;  %v346_v8 = vadd.f32 %v636_v48, %v847_v15  ;;  %v429_v22 = vmax.f32 %v325_v1, 0.0  ;;  %v466_v30 = vmax.f32 %v889_v5, %v900_v17  ;;  %v919_v31 = vsel %vm448_vm1, %v431_v10, -inf }
  0xd9   :  { %v337_v58 = vpop.f32.mrf.mxu1  ;;  %v242_v2 = vadd.f32 %v847_v15, %v241_v57  ;;  %v410_v7 = vmax.f32 %v250_v52, 0.0  ;;  %v922_v36 = vsel %vm448_vm1, %v405_v18, -inf }
  0xda   :  { %v613_v3 = vpop.f32.mrf.mxu0  ;;  %v338_v12 = vadd.f32 %v847_v15, %v337_v58  ;;  %v434_v28 = vmax.f32 %v346_v8, 0.0  ;;  %v931_v41 = vsel %vm448_vm1, %v429_v22, -inf }
  0xdb   :  { %v637_v4 = vpop.f32.mrf.mxu1  ;;  %v253_v11 = vadd.f32 %v613_v3, %v847_v15  ;;  %v408_v23 = vmax.f32 %v242_v2, 0.0  ;;  %v913_v27 = vsel %vm448_vm1, %v410_v7, -inf }
  0xdc   :  { %v244_v13 = vpop.f32.mrf.mxu0  ;;  %v432_v33 = vmax.f32 %v338_v12, 0.0  ;;  %v925_v38 = vadd.f32 %v637_v4, %v847_v15  ;;  %v511_v40 = vmax.f32 %v904_v20, %v913_v27  ;;  %v935_v48 = vsel %vm448_vm1, %v434_v28, -inf }
  0xdd   :  { %v340_v14 = vpop.f32.mrf.mxu1  ;;  %v245_v19 = vadd.f32 %v847_v15, %v244_v13  ;;  %v411_v32 = vmax.f32 %v253_v11, 0.0  ;;  %v480_v42 = vsel %vm448_vm1, %v408_v23, -inf }
  0xde   :  { %v616_v24 = vpop.f32.mrf.mxu0  ;;  %v938_v49 = vadd.f32 %v847_v15, %v340_v14  ;;  %v945_v55 = vsel %vm448_vm1, %v432_v33, -inf  ;;  %v481_v61 = vmax.f32 %v861_v43, %v480_v42  ;;  %v435_v63 = vmax.f32 %v925_v38, 0.0 }
  0xdf   :  { %v640_v25 = vpop.f32.mrf.mxu1  ;;  %v266_v29 = vadd.f32 %v616_v24, %v847_v15  ;;  %v409_v37 = vmax.f32 %v245_v19, 0.0  ;;  %v942_v52 = vsel %vm448_vm1, %v411_v32, -inf }
  0xe0   :  { %v257_v34 = vpop.f32.mrf.mxu0  ;;  %v948_v56 = vadd.f32 %v640_v25, %v847_v15  ;;  %v526_v8 = vmax.f32 %v922_v36, %v942_v52  ;;  %v433_v43 = vmax.f32 %v938_v49, 0.0 }
  0xe1   :  { %v353_v35 = vpop.f32.mrf.mxu1  ;;  %v258_v39 = vadd.f32 %v847_v15, %v257_v34  ;;  %v414_v45 = vmax.f32 %v266_v29, 0.0  ;;  %v495_v62 = vsel %vm448_vm1, %v409_v37, -inf }
  0xe2   :  { %v617_v46 = vpop.f32.mrf.mxu0  ;;  %v354_v57 = vadd.f32 %v847_v15, %v353_v35  ;;  %v496_v12 = vmax.f32 %v873_v53, %v495_v62  ;;  %v438_v13 = vmax.f32 %v948_v56, 0.0 }
  0xe3   :  { %v641_v47 = vpop.f32.mrf.mxu1  ;;  %v412_v50 = vmax.f32 %v258_v39, 0.0  ;;  %v269_v51 = vadd.f32 %v617_v46, %v847_v15  ;;  %v482_v1 = vsel %vm448_vm1, %v414_v45, -inf }
  0xe4   :  { %v260_v58 = vpop.f32.mrf.mxu0  ;;  %v436_v14 = vmax.f32 %v354_v57, 0.0  ;;  %v965_v23 = vmax.f32 %v481_v61, %v482_v1  ;;  %v976_v46 = vadd.f32 %v641_v47, %v847_v15 }
  0xe5   :  { %v356_v60 = vpop.f32.mrf.mxu1  ;;  %v261_v0 = vadd.f32 %v847_v15, %v260_v58  ;;  %v452_v2 = vsel %vm448_vm1, %v412_v50, -inf  ;;  %v415_v3 = vmax.f32 %v269_v51, 0.0 }
  0xe6   :  { %v620_v4 = vpop.f32.mrf.mxu0  ;;  %v357_v6 = vadd.f32 %v847_v15, %v356_v60  ;;  %v453_v24 = vmax.f32 %v451_v16, %v452_v2  ;;  %v460_v16 = vsel %vm448_vm1, %v436_v14, -inf }
  0xe7   :  { %v644_v7 = vpop.f32.mrf.mxu1  ;;  %v413_v10 = vmax.f32 %v261_v0, 0.0  ;;  %v282_v11 = vadd.f32 %v620_v4, %v847_v15  ;;  %v497_v29 = vsel %vm448_vm1, %v415_v3, -inf }
  0xe8   :  { %v273_v18 = vpop.f32.mrf.mxu0  ;;  %v378_v19 = vadd.f32 %v644_v7, %v847_v15  ;;  %v437_v33 = vmax.f32 %v357_v6, 0.0  ;;  %v980_v1 = vmax.f32 %v496_v12, %v497_v29 }
  0xe9   :  { %v369_v22 = vpop.f32.mrf.mxu1  ;;  %v418_v25 = vmax.f32 %v282_v11, 0.0  ;;  %v274_v28 = vadd.f32 %v847_v15, %v273_v18  ;;  %v467_v32 = vsel %vm448_vm1, %v413_v10, -inf }
  0xea   :  { %v621_v34 = vpop.f32.mrf.mxu0  ;;  %v370_v53 = vadd.f32 %v847_v15, %v369_v22  ;;  %v442_v51 = vmax.f32 %v378_v19, 0.0  ;;  %v468_v2 = vmax.f32 %v466_v30, %v467_v32  ;;  %v475_v7 = vsel %vm448_vm1, %v437_v33, -inf }
  0xeb   :  { %v645_v35 = vpop.f32.mrf.mxu1  ;;  %v454_v37 = vsel %vm448_vm1, %v418_v25, -inf  ;;  %v416_v39 = vmax.f32 %v274_v28, 0.0  ;;  %v285_v42 = vadd.f32 %v621_v34, %v847_v15 }
  0xec   :  { %v381_v45 = vadd.f32 %v645_v35, %v847_v15  ;;  %v455_v50 = vmax.f32 %v453_v24, %v454_v37  ;;  %v276_v57 = vpop.f32.mrf.mxu0  ;;  %v440_v62 = vmax.f32 %v370_v53, 0.0  ;;  %v462_v5 = vsel %vm448_vm1, %v442_v51, -inf }
  0xed   :  { %v372_v58 = vpop.f32.mrf.mxu1  ;;  %v512_v60 = vsel %vm448_vm1, %v416_v39, -inf  ;;  %v419_v61 = vmax.f32 %v285_v42, 0.0  ;;  %v277_v0 = vadd.f32 %v847_v15, %v276_v57 }
  0xee   :  { %v457_v3 = vmax.f32 %v455_v50, %v876_v54  ;;  %v443_v47 = vmax.f32 %v381_v45, 0.0  ;;  %v624_v4 = vpop.f32.mrf.mxu0  ;;  %v513_v12 = vmax.f32 %v511_v40, %v512_v60  ;;  %v520_v19 = vsel %vm448_vm1, %v440_v62, -inf }
  0xef   :  { %v648_v6 = vpop.f32.mrf.mxu1  ;;  %v469_v10 = vsel %vm448_vm1, %v419_v61, -inf  ;;  %v417_v11 = vmax.f32 %v277_v0, 0.0  ;;  %v298_v14 = vadd.f32 %v624_v4, %v847_v15  ;;  %v373_v27 = vadd.f32 %v847_v15, %v372_v58 }
  0xf0   :  { %v459_v18 = vmax.f32 %v457_v3, %v907_v21  ;;  %v470_v17 = vmax.f32 %v468_v2, %v469_v10  ;;  %v289_v54 = vpop.f32.mrf.mxu0  ;;  %v394_v25 = vadd.f32 %v648_v6, %v847_v15  ;;  %v477_v20 = vsel %vm448_vm1, %v443_v47, -inf }
  0xf1   :  { %v385_v30 = vpop.f32.mrf.mxu1  ;;  %v422_v22 = vmax.f32 %v298_v14, 0.0  ;;  %v290_v24 = vadd.f32 %v847_v15, %v289_v54  ;;  %v527_v32 = vsel %vm448_vm1, %v417_v11, -inf  ;;  %v441_v62 = vmax.f32 %v373_v27, 0.0 }
  0xf2   :  { %v461_v28 = vmax.f32 %v459_v18, %v460_v16  ;;  %v472_v29 = vmax.f32 %v470_v17, %v893_v9  ;;  %v625_v21 = vpop.f32.mrf.mxu0  ;;  %v386_v42 = vadd.f32 %v847_v15, %v385_v30  ;;  %v446_v16 = vmax.f32 %v394_v25, 0.0 }
  0xf3   :  { %v649_v40 = vpop.f32.mrf.mxu1  ;;  %v514_v33 = vsel %vm448_vm1, %v422_v22, -inf  ;;  %v420_v34 = vmax.f32 %v290_v24, 0.0  ;;  %v301_v53 = vadd.f32 %v625_v21, %v847_v15  ;;  %v528_v57 = vmax.f32 %v526_v8, %v527_v32 }
  0xf4   :  { %v463_v35 = vmax.f32 %v461_v28, %v462_v5  ;;  %v474_v37 = vmax.f32 %v472_v29, %v919_v31  ;;  %v515_v39 = vmax.f32 %v513_v12, %v514_v33  ;;  %v292_v9 = vpop.f32.mrf.mxu0  ;;  %v397_v3 = vadd.f32 %v649_v40, %v847_v15 }
  0xf5   :  { %v484_v45 = vsel %vm448_vm1, %v420_v34, -inf  ;;  %v423_v50 = vmax.f32 %v301_v53, 0.0  ;;  %v293_v51 = vadd.f32 %v847_v15, %v292_v9  ;;  %v388_v61 = vpop.f32.mrf.mxu1  ;;  %v522_v36 = vsel %vm448_vm1, %v446_v16, -inf }
  0xf6   :  { %539 = vst.msk [vmem:[%s1065_s3] sm:$0xff] %vm448_vm1, %v463_v35  ;;  %v476_v31 = vmax.f32 %v474_v37, %v475_v7  ;;  %v517_v58 = vmax.f32 %v515_v39, %v910_v26  ;;  %v485_v60 = vmax.f32 %v965_v23, %v484_v45  ;;  %v444_v52 = vmax.f32 %v386_v42, 0.0 }
  0xf7   :  { %v529_v0 = vsel %vm448_vm1, %v423_v50, -inf  ;;  %v421_v2 = vmax.f32 %v293_v51, 0.0  ;;  %v389_v8 = vadd.f32 %v847_v15, %v388_v61  ;;  %v533_v11 = vsel %vm448_vm1, %v435_v63, -inf }
  0xf8   :  { %v478_v47 = vmax.f32 %v476_v31, %v477_v20  ;;  %v487_v4 = vmax.f32 %v485_v60, %v864_v44  ;;  %v519_v6 = vmax.f32 %v517_v58, %v935_v48  ;;  %v530_v10 = vmax.f32 %v528_v57, %v529_v0 }
  0xf9   :  { %v499_v26 = vsel %vm448_vm1, %v421_v2, -inf  ;;  %v490_v15 = vsel %vm448_vm1, %v438_v13, -inf  ;;  %v439_v14 = vmax.f32 %v976_v46, 0.0  ;;  %v447_v12 = vmax.f32 %v397_v3, 0.0 }
  0xfa   :  { %540 = vst.msk [vmem:[%s1065_s3 + $0x8] sm:$0xff] %vm448_vm1, %v478_v47  ;;  %v521_v23 = vmax.f32 %v519_v6, %v520_v19  ;;  %v532_v7 = vmax.f32 %v530_v10, %v931_v41  ;;  %v489_v44 = vmax.f32 %v487_v4, %v945_v55  ;;  %v500_v48 = vmax.f32 %v980_v1, %v499_v26 }
  0xfb   :  { %v503_v55 = vsel %vm448_vm1, %v433_v43, -inf  ;;  %v535_v38 = vsel %vm448_vm1, %v441_v62, -inf  ;;  %v492_v63 = vsel %vm448_vm1, %v444_v52, -inf  ;;  %v445_v1 = vmax.f32 %v389_v8, 0.0 }
  0xfc   :  { %v523_v18 = vmax.f32 %v521_v23, %v522_v36  ;;  %v491_v5 = vmax.f32 %v489_v44, %v490_v15  ;;  %v502_v17 = vmax.f32 %v500_v48, %v880_v59  ;;  %v534_v41 = vmax.f32 %v532_v7, %v533_v11 }
  0xfd   :  { %v505_v59 = vsel %vm448_vm1, %v439_v14, -inf  ;;  %v537_v54 = vsel %vm448_vm1, %v447_v12, -inf  ;;  %v507_v30 = vsel %vm448_vm1, %v445_v1, -inf }
  0xfe   :  { %543 = vst.msk [vmem:[%s1065_s3 + $0x20] sm:$0xff] %vm448_vm1, %v523_v18  ;;  %v493_v56 = vmax.f32 %v491_v5, %v492_v63  ;;  %v536_v13 = vmax.f32 %v534_v41, %v535_v38  ;;  %v504_v46 = vmax.f32 %v502_v17, %v503_v55 }
 0x100   :  { %541 = vst.msk [vmem:[%s1065_s3 + $0x10] sm:$0xff] %vm448_vm1, %v493_v56  ;;  %v538_v49 = vmax.f32 %v536_v13, %v537_v54  ;;  %v506_v43 = vmax.f32 %v504_v46, %v505_v59 }
 0x102   :  { %544 = vst.msk [vmem:[%s1065_s3 + $0x28] sm:$0xff] %vm448_vm1, %v538_v49  ;;  %v508_v19 = vmax.f32 %v506_v43, %v507_v30 }
 0x104   :  { %542 = vst.msk [vmem:[%s1065_s3 + $0x18] sm:$0xff] %vm448_vm1, %v508_v19 }

</bundles_post_ra>
